<compile_context>
chip_gen: v5e
topology: v5e:2x2
jax: 0.10.0
libtpu: 0.0.40
codegen_flags: <defaults>
</compile_context>

<pallas_src>
import math

import jax
import jax.numpy as jnp
from jax.experimental import pallas as pl
from jax.experimental.pallas import tpu as pltpu

_LANE = 128
_SUBLANE_BF16 = 16                       # bf16 packs 2 rows per f32 sublane

_RESIDENT_WEIGHT_BUDGET = 20 << 20       # keep fused weight resident below this
_VMEM_SOFT_CAP = 30 << 20                # steady-state VMEM target (v7x-safe)
_VMEM_LIMIT_CAP = 56 << 20               # never request more scoped VMEM than this


def _round_up(x, m):
    return (x + m - 1) // m * m


def _default_tile_n():
    """v5e's MXUs are 128x128 -> 256-wide output tiles buy nothing there."""
    try:
        kind = jax.devices()[0].device_kind.lower()
    except Exception:
        return 256
    return 128 if ("v5 lite" in kind or "v5e" in kind or "v5lite" in kind) else 256


def _invariant_spec(block_shape, index_map):
    """Single-buffered BlockSpec for grid-invariant operands (weight / bias).

    Their index_map is constant across the M grid, so double-buffering only
    doubles resident VMEM.  Falls back to a normal spec if this JAX build does
    not accept pipeline_mode / Buffered(1).
    """
    if hasattr(pl, "Buffered"):
        try:
            return pl.BlockSpec(block_shape, index_map,
                                pipeline_mode=pl.Buffered(1))
        except (TypeError, ValueError):
            pass
    return pl.BlockSpec(block_shape, index_map)


# --------------------------------------------------------------------------
# Kernels
# --------------------------------------------------------------------------
def _resident_kernel(x_ref, w_ref, b_ref, o_ref):
    # One real MXU matmul produces the interleaved (yr0, yi0, yr1, ...) slab:
    # bf16 (or f32) operands, f32 accumulation, f32 bias add, lane-dense store.
    o_ref[...] = (
        jnp.dot(x_ref[...], w_ref[...], preferred_element_type=jnp.float32)
        + b_ref[...]
    )


def _tiled_kernel(x_ref, w_ref, b_ref, o_ref, acc_ref):
    # (M, N, K)-tiled variant with an f32 VMEM accumulator, used when the fused
    # weight is too large to stay resident (v7x: 64 MiB VMEM per TensorCore).
    k = pl.program_id(2)

    @pl.when(k == 0)
    def _init():
        acc_ref[...] = jnp.zeros_like(acc_ref)

    acc_ref[...] += jnp.dot(x_ref[...], w_ref[...],
                            preferred_element_type=jnp.float32)

    @pl.when(k == pl.num_programs(2) - 1)
    def _finalize():
        o_ref[...] = acc_ref[...] + b_ref[...]


# --------------------------------------------------------------------------
# One-time parameter preparation (hoisted out of the per-call path)
# --------------------------------------------------------------------------
def prepare_complex_linear_params(weight, bias=None, *,
                                  compute_dtype=jnp.bfloat16):
    """weight: (N, K) complex64, bias: (N,) complex64 or None.

    Builds the fused real weight for
        [x interleaved re0,im0,...] @ W_fused = [y interleaved yr0,yi0,...]
    i.e. W_fused[2k+p, 2n+q] realises the 2x2 block [[Wr, Wi], [-Wi, Wr]]
    per (k, n).  Row interleaving matches complex64 memory order of x (so the
    per-call activation prep is one fused pass); column interleaving lets the
    epilogue be one contiguous slice + pairwise complex pack.  The lane
    (output) dim is zero-padded to a multiple of 128 for unmasked stores.
    """
    N, K = weight.shape
    wr = jnp.real(weight).T.astype(jnp.float32)            # (K, N)
    wi = jnp.imag(weight).T.astype(jnp.float32)            # (K, N)
    w_fused = jnp.stack(
        [jnp.stack([wr, wi], axis=-1),                     # rows for x.real
         jnp.stack([-wi, wr], axis=-1)],                   # rows for x.imag
        axis=1,
    ).reshape(2 * K, 2 * N)                                # (2K, 2N) interleaved

    if bias is None:
        b_fused = jnp.zeros((1, 2 * N), jnp.float32)
    else:
        br = jnp.real(bias).astype(jnp.float32)
        bi = jnp.imag(bias).astype(jnp.float32)
        b_fused = jnp.stack([br, bi], axis=-1).reshape(1, 2 * N)

    n_cols = _round_up(2 * N, _LANE)
    pad = n_cols - 2 * N
    if pad:
        w_fused = jnp.pad(w_fused, ((0, 0), (0, pad)))
        b_fused = jnp.pad(b_fused, ((0, 0), (0, pad)))

    # Weight in the compute dtype (bf16 by default); bias stays f32 (it is
    # added to the f32 accumulator and is tiny, so bf16 buys nothing there).
    return {
        "w_cat": w_fused.astype(compute_dtype),
        "b_cat": b_fused,
        "in_features": K,
        "out_features": N,
    }


# --------------------------------------------------------------------------
# Forward application
# --------------------------------------------------------------------------
def _pick_row_tile(M, tm):
    m_aligned = _round_up(M, _SUBLANE_BF16)
    tm = max(_SUBLANE_BF16, min(_round_up(tm, _SUBLANE_BF16), m_aligned))
    # Prefer >= 2 row tiles when the batch allows: multiple "parallel" grid
    # steps are what lets v7x's two TensorCores both get work.
    if tm >= m_aligned and m_aligned >= 2 * _SUBLANE_BF16:
        tm = _round_up(m_aligned // 2, _SUBLANE_BF16)
    return tm


def _apply_resident(x_cat, w_cat, b_cat, M, tm):
    two_k, n_cols = w_cat.shape
    x_item = jnp.dtype(x_cat.dtype).itemsize

    tm = _pick_row_tile(M, tm)

    def vmem_need(t, w_buffers):
        return (w_buffers * w_cat.size * x_item          # resident fused weight
                + b_cat.size * 4                          # bias row
                + 2 * t * two_k * x_item                  # double-buffered x tile
                + 2 * t * n_cols * 4)                     # double-buffered out tile

    while tm > _SUBLANE_BF16 and vmem_need(tm, 1) > _VMEM_SOFT_CAP:
        tm = _round_up(tm // 2, _SUBLANE_BF16)

    m_pad = _round_up(M, tm)
    if m_pad != M:
        x_cat = jnp.pad(x_cat, ((0, m_pad - M), (0, 0)))
    grid = (m_pad // tm,)

    # Size the scoped-VMEM limit from the actual buffers (v5e's default is only
    # 16 MiB); assume a double-buffered weight as worst case in case the
    # single-buffered spec is unavailable on this build.
    vmem_limit = int(min(max(int(vmem_need(tm, 2) * 1.5) + (4 << 20), 16 << 20),
                         _VMEM_LIMIT_CAP))

    cost = pl.CostEstimate(
        flops=2 * m_pad * two_k * n_cols,
        transcendentals=0,
        bytes_accessed=(m_pad * two_k * x_item + w_cat.size * x_item
                        + b_cat.size * 4 + m_pad * n_cols * 4),
    )

    def build(single_buffer_invariants):
        spec = _invariant_spec if single_buffer_invariants else pl.BlockSpec
        return pl.pallas_call(
            _resident_kernel,
            out_shape=jax.ShapeDtypeStruct((m_pad, n_cols), jnp.float32),
            grid_spec=pltpu.PrefetchScalarGridSpec(
                num_scalar_prefetch=0,
                grid=grid,
                in_specs=[
                    pl.BlockSpec((tm, two_k), lambda i: (i, 0)),
                    spec((two_k, n_cols), lambda i: (0, 0)),
                    spec((1, n_cols), lambda i: (0, 0)),
                ],
                out_specs=pl.BlockSpec((tm, n_cols), lambda i: (i, 0)),
            ),
            compiler_params=pltpu.CompilerParams(
                dimension_semantics=("parallel",),
                vmem_limit_bytes=vmem_limit,
            ),
            cost_estimate=cost,
        )

    try:
        return build(True)(x_cat, w_cat, b_cat)
    except Exception:
        # Graceful fallback if this build rejects single-buffered BlockSpecs.
        return build(False)(x_cat, w_cat, b_cat)


def _apply_tiled(x_cat, w_cat, b_cat, M, tm, tn, tk):
    two_k, n_cols = w_cat.shape
    x_item = jnp.dtype(x_cat.dtype).itemsize

    tn = _round_up(max(_LANE, min(tn, n_cols)), _LANE)
    tk = _round_up(max(_LANE, min(tk, _round_up(two_k, _LANE))), _LANE)
    n_pad = _round_up(n_cols, tn)
    k_pad = _round_up(two_k, tk)

    # TODO(synk): if the tiled path is hit repeatedly (very large layers on
    # v7x), hoist this tile padding of the weight into
    # prepare_complex_linear_params instead of re-padding per call.
    if k_pad != two_k or n_pad != n_cols:
        w_cat = jnp.pad(w_cat, ((0, k_pad - two_k), (0, n_pad - n_cols)))
        b_cat = jnp.pad(b_cat, ((0, 0), (0, n_pad - n_cols)))
    if k_pad != two_k:
        x_cat = jnp.pad(x_cat, ((0, 0), (0, k_pad - two_k)))

    tm = _pick_row_tile(M, tm)
    m_pad = _round_up(M, tm)
    if m_pad != M:
        x_cat = jnp.pad(x_cat, ((0, m_pad - M), (0, 0)))

    grid = (m_pad // tm, n_pad // tn, k_pad // tk)

    need = (2 * tm * tk * x_item + 2 * tk * tn * x_item + 2 * tn * 4
            + 2 * tm * tn * 4 + tm * tn * 4)
    vmem_limit = int(min(max(int(need * 1.5) + (4 << 20), 16 << 20),
                         _VMEM_LIMIT_CAP))

    cost = pl.CostEstimate(
        flops=2 * m_pad * k_pad * n_pad,
        transcendentals=0,
        bytes_accessed=(m_pad * k_pad * x_item * (n_pad // tn)
                        + k_pad * n_pad * x_item * (m_pad // tm)
                        + n_pad * 4 + m_pad * n_pad * 4),
    )

    return pl.pallas_call(
        _tiled_kernel,
        out_shape=jax.ShapeDtypeStruct((m_pad, n_pad), jnp.float32),
        grid_spec=pltpu.PrefetchScalarGridSpec(
            num_scalar_prefetch=0,
            grid=grid,
            in_specs=[
                pl.BlockSpec((tm, tk), lambda i, j, k: (i, k)),
                pl.BlockSpec((tk, tn), lambda i, j, k: (k, j)),
                pl.BlockSpec((1, tn), lambda i, j, k: (0, j)),
            ],
            out_specs=pl.BlockSpec((tm, tn), lambda i, j, k: (i, j)),
            scratch_shapes=[pltpu.VMEM((tm, tn), jnp.float32)],
        ),
        compiler_params=pltpu.CompilerParams(
            dimension_semantics=("parallel", "parallel", "arbitrary"),
            vmem_limit_bytes=vmem_limit,
        ),
        cost_estimate=cost,
    )(x_cat, w_cat, b_cat)


def complex_linear_apply(params, x, *, tm=512, tn=None, tk=512,
                         force_tiled=False):
    """y = x @ W^T + b for complex64 x of shape (M, K); returns complex64 (M, N)."""
    w_cat = params["w_cat"]                    # (2K, n_cols), prepared once
    b_cat = params["b_cat"]                    # (1, n_cols) f32, prepared once
    K = params["in_features"]
    N = params["out_features"]
    M, k_in = x.shape
    assert k_in == K, (k_in, K)
    two_k, _ = w_cat.shape
    cdtype = w_cat.dtype

    # Interleaved real "view" of x: (M, 2K) laid out re0,im0,re1,... which
    # matches complex64 memory order, so this is ONE fused pass over x (XLA
    # cannot bitcast complex64, so stack+reshape is the single-pass
    # equivalent) instead of real/imag planes plus a concat.
    x_cat = (jnp.stack([jnp.real(x), jnp.imag(x)], axis=-1)
             .reshape(M, two_k).astype(cdtype))

    w_bytes = w_cat.size * jnp.dtype(cdtype).itemsize
    if force_tiled or w_bytes > _RESIDENT_WEIGHT_BUDGET:
        if tn is None:
            tn = _default_tile_n()
        out = _apply_tiled(x_cat, w_cat, b_cat, M, tm, tn, tk)
    else:
        out = _apply_resident(x_cat, w_cat, b_cat, M, tm)

    # Epilogue: one contiguous slice + pairwise complex pack.
    y_pairs = out[:M, :2 * N].reshape(M, N, 2)
    return jax.lax.complex(y_pairs[..., 0], y_pairs[..., 1])


# --------------------------------------------------------------------------
# Deterministic init mirroring ComplexLinear.reset_parameters
# --------------------------------------------------------------------------
def _kaiming_uniform(key, shape, fan_in):
    # kaiming_uniform_ with a=sqrt(5): bound = 1/sqrt(fan_in)
    bound = 1.0 / math.sqrt(fan_in)
    return jax.random.uniform(key, shape, jnp.float32, -bound, bound)


def _make_complex_linear(key, in_features, out_features, with_bias=True):
    k_wr, k_wi, k_br, k_bi = jax.random.split(key, 4)
    w_real = _kaiming_uniform(k_wr, (out_features, in_features), in_features)
    w_imag = _kaiming_uniform(k_wi, (out_features, in_features), in_features)
    weight = jax.lax.complex(w_real, w_imag)
    bias = None
    if with_bias:
        bound = 1.0 / math.sqrt(in_features)
        b_real = jax.random.uniform(k_br, (out_features,), jnp.float32, -bound, bound)
        b_imag = jax.random.uniform(k_bi, (out_features,), jnp.float32, -bound, bound)
        bias = jax.lax.complex(b_real, b_imag)
    return weight, bias


if __name__ == "__main__":
    root = jax.random.PRNGKey(0)
    k_layer1, k_x1, k_layer2, k_x2 = jax.random.split(root, 4)

    # ---- Test 1: small ComplexLinear, weight-resident single-matmul path ----
    in1, out1, batch1 = 32, 16, 8
    weight1, bias1 = _make_complex_linear(k_layer1, in1, out1)
    kx1r, kx1i = jax.random.split(k_x1)
    x1 = jax.lax.complex(jax.random.normal(kx1r, (batch1, in1), jnp.float32),
                         jax.random.normal(kx1i, (batch1, in1), jnp.float32))

    params1 = prepare_complex_linear_params(weight1, bias1)   # one-time prep
    y1 = jax.block_until_ready(complex_linear_apply(params1, x1))
    y1_ref = x1 @ weight1.T + bias1[None, :]
    assert y1.shape == (batch1, out1) and y1.dtype == jnp.complex64
    # bf16 operands + f32 accumulation -> tolerance loosened vs pure f32.
    assert jnp.allclose(y1, y1_ref, atol=5e-2, rtol=5e-2)

    # ---- Test 2: force the (M, N, K)-tiled accumulator path (v7x-style) ----
    in2, out2, batch2 = 160, 96, 200
    weight2, bias2 = _make_complex_linear(k_layer2, in2, out2)
    kx2r, kx2i = jax.random.split(k_x2)
    x2 = jax.lax.complex(jax.random.normal(kx2r, (batch2, in2), jnp.float32),
                         jax.random.normal(kx2i, (batch2, in2), jnp.float32))

    params2 = prepare_complex_linear_params(weight2, bias2)
    y2 = jax.block_until_ready(
        complex_linear_apply(params2, x2, force_tiled=True,
                             tm=128, tn=128, tk=256))
    y2_ref = x2 @ weight2.T + bias2[None, :]
    assert y2.shape == (batch2, out2) and y2.dtype == jnp.complex64
    assert jnp.allclose(y2, y2_ref, atol=5e-2, rtol=5e-2)

    print("KERNEL_OK")
</pallas_src>

<mosaic_0001>
module attributes {stable_mosaic.version = 11 : i64} {
  func.func @_resident_kernel(%arg0: i32, %arg1: memref<16x64xbf16, #tpu.memory_space<vmem>>, %arg2: memref<64x128xbf16, #tpu.memory_space<vmem>>, %arg3: memref<1x128xf32, #tpu.memory_space<vmem>>, %arg4: memref<16x128xf32, #tpu.memory_space<vmem>>) attributes {dimension_semantics = [#tpu.dimension_semantics<parallel>], iteration_bounds = array<i64: 1>, scalar_prefetch = 0 : i64, scratch_operands = 0 : i64, tpu.core_type = #tpu.core_type<tc>, window_params = [{transform_indices = @transform_0, window_bounds = array<i64: 16, 64>}, {pipeline_mode = #tpu.pipeline_mode<synchronous>, transform_indices = @transform_1, window_bounds = array<i64: 64, 128>}, {pipeline_mode = #tpu.pipeline_mode<synchronous>, transform_indices = @transform_2, window_bounds = array<i64: 1, 128>}, {transform_indices = @transform_3, window_bounds = array<i64: 16, 128>}]} {
    %c0 = arith.constant 0 : index
    %c0_0 = arith.constant 0 : index
    %0 = vector.load %arg1[%c0, %c0_0] : memref<16x64xbf16, #tpu.memory_space<vmem>>, vector<16x64xbf16>
    %c0_1 = arith.constant 0 : index
    %c0_2 = arith.constant 0 : index
    %1 = vector.load %arg2[%c0_1, %c0_2] : memref<64x128xbf16, #tpu.memory_space<vmem>>, vector<64x128xbf16>
    %cst = arith.constant dense<0.000000e+00> : vector<16x128xf32>
    %2 = tpu.matmul %0, %1, %cst {dimension_numbers = #tpu.dot_dimension_numbers<[1], [0], [0], [1], [0, 0, 1, 1], [], []>} : vector<16x64xbf16>, vector<64x128xbf16>, vector<16x128xf32> -> vector<16x128xf32>
    %c0_3 = arith.constant 0 : index
    %c0_4 = arith.constant 0 : index
    %3 = vector.load %arg3[%c0_3, %c0_4] : memref<1x128xf32, #tpu.memory_space<vmem>>, vector<1x128xf32>
    %4 = vector.broadcast %3 : vector<1x128xf32> to vector<16x128xf32>
    %5 = arith.addf %2, %4 : vector<16x128xf32>
    %c0_5 = arith.constant 0 : index
    %c0_6 = arith.constant 0 : index
    %6 = vector.load %arg4[%c0_5, %c0_6] : memref<16x128xf32, #tpu.memory_space<vmem>>, vector<16x128xf32>
    tpu.vector_store %arg4[%c0_5, %c0_6], %5 {strides = array<i32>} : memref<16x128xf32, #tpu.memory_space<vmem>>, vector<16x128xf32>,
    return
  }
  func.func @transform_0(%arg0: i32) -> (i32, i32) {
    %c0_i32 = arith.constant 0 : i32
    %c0_i32_0 = arith.constant 0 : i32
    return %arg0, %c0_i32 : i32, i32
  }
  func.func @transform_1(%arg0: i32) -> (i32, i32) {
    %c0_i32 = arith.constant 0 : i32
    %c0_i32_0 = arith.constant 0 : i32
    %c0_i32_1 = arith.constant 0 : i32
    return %c0_i32, %c0_i32_0 : i32, i32
  }
  func.func @transform_2(%arg0: i32) -> (i32, i32) {
    %c0_i32 = arith.constant 0 : i32
    %c0_i32_0 = arith.constant 0 : i32
    %c0_i32_1 = arith.constant 0 : i32
    return %c0_i32, %c0_i32_0 : i32, i32
  }
  func.func @transform_3(%arg0: i32) -> (i32, i32) {
    %c0_i32 = arith.constant 0 : i32
    %c0_i32_0 = arith.constant 0 : i32
    return %arg0, %c0_i32 : i32, i32
  }
}

module attributes {stable_mosaic.version = 11 : i64} {
  func.func @_resident_kernel(%arg0: i32, %arg1: memref<16x64xbf16, #tpu.memory_space<vmem>>, %arg2: memref<64x128xbf16, #tpu.memory_space<vmem>>, %arg3: memref<1x128xf32, #tpu.memory_space<vmem>>, %arg4: memref<16x128xf32, #tpu.memory_space<vmem>>) attributes {dimension_semantics = [#tpu.dimension_semantics<parallel>], iteration_bounds = array<i64: 1>, scalar_prefetch = 0 : i64, scratch_operands = 0 : i64, tpu.core_type = #tpu.core_type<tc>, window_params = [{transform_indices = @transform_0, window_bounds = array<i64: 16, 64>}, {pipeline_mode = #tpu.pipeline_mode<synchronous>, transform_indices = @transform_1, window_bounds = array<i64: 64, 128>}, {pipeline_mode = #tpu.pipeline_mode<synchronous>, transform_indices = @transform_2, window_bounds = array<i64: 1, 128>}, {transform_indices = @transform_3, window_bounds = array<i64: 16, 128>}]} {
    %c0 = arith.constant 0 : index
    %c0_0 = arith.constant 0 : index
    %0 = vector.load %arg1[%c0, %c0_0] : memref<16x64xbf16, #tpu.memory_space<vmem>>, vector<16x64xbf16>
    %c0_1 = arith.constant 0 : index
    %c0_2 = arith.constant 0 : index
    %1 = vector.load %arg2[%c0_1, %c0_2] : memref<64x128xbf16, #tpu.memory_space<vmem>>, vector<64x128xbf16>
    %cst = arith.constant dense<0.000000e+00> : vector<16x128xf32>
    %2 = tpu.matmul %0, %1, %cst {dimension_numbers = #tpu.dot_dimension_numbers<[1], [0], [0], [1], [0, 0, 1, 1], [], []>} : vector<16x64xbf16>, vector<64x128xbf16>, vector<16x128xf32> -> vector<16x128xf32>
    %c0_3 = arith.constant 0 : index
    %c0_4 = arith.constant 0 : index
    %3 = vector.load %arg3[%c0_3, %c0_4] : memref<1x128xf32, #tpu.memory_space<vmem>>, vector<1x128xf32>
    %4 = vector.broadcast %3 : vector<1x128xf32> to vector<16x128xf32>
    %5 = arith.addf %2, %4 : vector<16x128xf32>
    %c0_5 = arith.constant 0 : index
    %c0_6 = arith.constant 0 : index
    %6 = vector.load %arg4[%c0_5, %c0_6] : memref<16x128xf32, #tpu.memory_space<vmem>>, vector<16x128xf32>
    tpu.vector_store %arg4[%c0_5, %c0_6], %5 {strides = array<i32>} : memref<16x128xf32, #tpu.memory_space<vmem>>, vector<16x128xf32>,
    return
  }
  func.func @transform_0(%arg0: i32) -> (i32, i32) {
    %c0_i32 = arith.constant 0 : i32
    %c0_i32_0 = arith.constant 0 : i32
    return %arg0, %c0_i32 : i32, i32
  }
  func.func @transform_1(%arg0: i32) -> (i32, i32) {
    %c0_i32 = arith.constant 0 : i32
    %c0_i32_0 = arith.constant 0 : i32
    %c0_i32_1 = arith.constant 0 : i32
    return %c0_i32, %c0_i32_0 : i32, i32
  }
  func.func @transform_2(%arg0: i32) -> (i32, i32) {
    %c0_i32 = arith.constant 0 : i32
    %c0_i32_0 = arith.constant 0 : i32
    %c0_i32_1 = arith.constant 0 : i32
    return %c0_i32, %c0_i32_0 : i32, i32
  }
  func.func @transform_3(%arg0: i32) -> (i32, i32) {
    %c0_i32 = arith.constant 0 : i32
    %c0_i32_0 = arith.constant 0 : i32
    return %arg0, %c0_i32 : i32, i32
  }
}

</mosaic_0001>

<bundles_post_ra>
// kernel: tpu_custom_call.1
= control target key start
LH: loop header
LB: loop body
LE: loop exit
PB: predicated region body
PF: predicated region fallthrough
CT: control target
= control target key end

     0   :  { %8 = vsyncpa [#allocation3], 0  ;;  %s282_s0 = inlined_call_operand.hbm [shape: bf16[16,64], index: 0, kind: input, shape index: {}]   ;;  %s283_s1 = inlined_call_operand.hbm [shape: bf16[64,128], index: 1, kind: input, shape index: {}]   ;;  %s284_s2 = inlined_call_operand.vmem [shape: f32[1,128], index: 2, kind: input, shape index: {}]   ;;  %s285_s3 = inlined_call_operand.hbm [shape: f32[16,128], index: 3, kind: output, shape index: {}]  }
   0x1   :  { %9 = vsyncpa [#allocation6], 0 }
   0x2   :  { %10 = vsyncpa [#allocation4], 0  ;;  %s15_s14 = sshll.u32 %s282_s0, 4  ;;  %s243_s15 = smov [#allocation2]   ;;  %s16_s14 = int_to_ptr.hbm [resolvable:$true] %s15_s14 }
   0x3   :  { %s17_s16 = sshll.u32 %s243_s15, 4  ;;  %s28_s19 = sshll.u32 %s283_s1, 4  ;;  %s18_s16 = int_to_ptr.vmem [resolvable:$true] %s17_s16  ;;  %s29_s19 = int_to_ptr.hbm [resolvable:$true] %s28_s19 }
   0x4   :  { %s244_s20 = smov 64   ;;  %s245_s21 = smov 4  }
   0x5   :  { %23 = dma.hbm_to_vmem [thread:$0]  %s16_s14, 128, %s18_s16, [#allocation3], %s244_s20, %s244_s20, %s245_s21  }
   0x6   :  { %s246_s22 = smov [#allocation5]  }
   0x7   :  { %s30_s23 = sshll.u32 %s246_s22, 4  ;;  %s31_s23 = int_to_ptr.vmem [resolvable:$true] %s30_s23 }
   0x8   :  { %36 = dma.hbm_to_vmem [thread:$0]  %s29_s19, 512, %s31_s23, [#allocation6], %s244_s20, %s244_s20, %s245_s21  }
   0x9   :  { %237 = dma.done.wait [#allocation3], 128  }
   0xa   :  { %238 = vsyncadd [#allocation3], 4294967168 }
   0xb   :  { %239 = dma.done.wait [#allocation6], 512  }
   0xc   :  { %240 = vsyncadd [#allocation6], 4294966784  ;;  %v156_v0 = vld [vmem:[#allocation5 + $0x18] sm:$0xff]  ;;  %v155_v1 = vld [vmem:[#allocation5 + $0x10] sm:$0xff]  ;;  %vm91_vm0 = vcmask 523264   ;;  %s247_s24 = smov [#allocation7]  }
   0xd   :  { %99 = vmatpush.bf16.msra.mxu0 %v156_v0  ;;  %v154_v2 = vld [vmem:[#allocation5 + $0x8] sm:$0xff]  ;;  %v153_v3 = vld [vmem:[#allocation5] sm:$0xff]  ;;  %v152_v4 = vld [vmem:[#allocation2] sm:$0xff]  ;;  %s115_s25 = sshll.u32 %s247_s24, 4  ;;  %s117_s28 = sshll.u32 %s285_s3, 4  ;;  %s116_s25 = int_to_ptr.vmem [resolvable:$true] %s115_s25  ;;  %s118_s28 = int_to_ptr.hbm [resolvable:$true] %s117_s28 }
   0xe   :  { %v164_v5 = vld [vmem:[%s284_s2] ss:$0 sm:$0xff]  ;;  %s248_s29 = smov 128   ;;  %s249_s30 = smov 8  }
  0x11   :  { %100 = vmatpush.bf16.msra.mxu0 %v155_v1 }
  0x15   :  { %101 = vmatpush.bf16.msra.mxu0 %v154_v2 }
  0x19   :  { %102 = vmatpush.bf16.msra.mxu0 %v153_v3 }
  0x1c   :  { %151 = vmatmul.msk.bf16.vlgmr.msra.gmra.mxu0 %vm91_vm0, %v152_v4 }
  0x99   :  { %v104_v6 = vpop.f32.mrf.mxu0 }
  0x9a   :  { %v105_v7 = vadd.f32 %v164_v5, %v104_v6 }
  0x9c   :  { %109 = vst [vmem:[#allocation7] sm:$0xff] %v105_v7 }
  0xa1   :  { %v106_v8 = vpop.f32.mrf.mxu0 }
  0xa2   :  { %v107_v9 = vadd.f32 %v164_v5, %v106_v8 }
  0xa4   :  { %110 = vst [vmem:[#allocation7 + $0x8] sm:$0xff] %v107_v9 }
  0xa5   :  { %123 = dma.vmem_to_hbm [thread:$0]  %s116_s25, 256, %s118_s28, [#allocation4], %s248_s29, %s248_s29, %s249_s30  }
  0xa6   :  { %241 = dma.done.wait [#allocation4], 256  }
  0xa7   :  { %242 = vsyncadd [#allocation4], 4294967040 }
  0xa8   :  { %128 = vsyncpa [#allocation3], 1 }
  0xa9   :  { %129 = vsyncpa [#allocation6], 1 }
  0xaa   :  { %130 = vsyncpa [#allocation4], 1 }

// kernel: tpu_custom_call.1
= control target key start
LH: loop header
LB: loop body
LE: loop exit
PB: predicated region body
PF: predicated region fallthrough
CT: control target
= control target key end

     0   :  { %8 = vsyncpa [#allocation3], 0  ;;  %s282_s0 = inlined_call_operand.hbm [shape: bf16[16,64], index: 0, kind: input, shape index: {}]   ;;  %s283_s1 = inlined_call_operand.hbm [shape: bf16[64,128], index: 1, kind: input, shape index: {}]   ;;  %s284_s2 = inlined_call_operand.vmem [shape: f32[1,128], index: 2, kind: input, shape index: {}]   ;;  %s285_s3 = inlined_call_operand.hbm [shape: f32[16,128], index: 3, kind: output, shape index: {}]  }
   0x1   :  { %9 = vsyncpa [#allocation6], 0 }
   0x2   :  { %10 = vsyncpa [#allocation4], 0  ;;  %s15_s14 = sshll.u32 %s282_s0, 4  ;;  %s243_s15 = smov [#allocation2]   ;;  %s16_s14 = int_to_ptr.hbm [resolvable:$true] %s15_s14 }
   0x3   :  { %s17_s16 = sshll.u32 %s243_s15, 4  ;;  %s28_s19 = sshll.u32 %s283_s1, 4  ;;  %s18_s16 = int_to_ptr.vmem [resolvable:$true] %s17_s16  ;;  %s29_s19 = int_to_ptr.hbm [resolvable:$true] %s28_s19 }
   0x4   :  { %s244_s20 = smov 64   ;;  %s245_s21 = smov 4  }
   0x5   :  { %23 = dma.hbm_to_vmem [thread:$0]  %s16_s14, 128, %s18_s16, [#allocation3], %s244_s20, %s244_s20, %s245_s21  }
   0x6   :  { %s246_s22 = smov [#allocation5]  }
   0x7   :  { %s30_s23 = sshll.u32 %s246_s22, 4  ;;  %s31_s23 = int_to_ptr.vmem [resolvable:$true] %s30_s23 }
   0x8   :  { %36 = dma.hbm_to_vmem [thread:$0]  %s29_s19, 512, %s31_s23, [#allocation6], %s244_s20, %s244_s20, %s245_s21  }
   0x9   :  { %237 = dma.done.wait [#allocation3], 128  }
   0xa   :  { %238 = vsyncadd [#allocation3], 4294967168 }
   0xb   :  { %239 = dma.done.wait [#allocation6], 512  }
   0xc   :  { %240 = vsyncadd [#allocation6], 4294966784  ;;  %v156_v0 = vld [vmem:[#allocation5 + $0x18] sm:$0xff]  ;;  %v155_v1 = vld [vmem:[#allocation5 + $0x10] sm:$0xff]  ;;  %vm91_vm0 = vcmask 523264   ;;  %s247_s24 = smov [#allocation7]  }
   0xd   :  { %99 = vmatpush.bf16.msra.mxu0 %v156_v0  ;;  %v154_v2 = vld [vmem:[#allocation5 + $0x8] sm:$0xff]  ;;  %v153_v3 = vld [vmem:[#allocation5] sm:$0xff]  ;;  %v152_v4 = vld [vmem:[#allocation2] sm:$0xff]  ;;  %s115_s25 = sshll.u32 %s247_s24, 4  ;;  %s117_s28 = sshll.u32 %s285_s3, 4  ;;  %s116_s25 = int_to_ptr.vmem [resolvable:$true] %s115_s25  ;;  %s118_s28 = int_to_ptr.hbm [resolvable:$true] %s117_s28 }
   0xe   :  { %v164_v5 = vld [vmem:[%s284_s2] ss:$0 sm:$0xff]  ;;  %s248_s29 = smov 128   ;;  %s249_s30 = smov 8  }
  0x11   :  { %100 = vmatpush.bf16.msra.mxu0 %v155_v1 }
  0x15   :  { %101 = vmatpush.bf16.msra.mxu0 %v154_v2 }
  0x19   :  { %102 = vmatpush.bf16.msra.mxu0 %v153_v3 }
  0x1c   :  { %151 = vmatmul.msk.bf16.vlgmr.msra.gmra.mxu0 %vm91_vm0, %v152_v4 }
  0x99   :  { %v104_v6 = vpop.f32.mrf.mxu0 }
  0x9a   :  { %v105_v7 = vadd.f32 %v164_v5, %v104_v6 }
  0x9c   :  { %109 = vst [vmem:[#allocation7] sm:$0xff] %v105_v7 }
  0xa1   :  { %v106_v8 = vpop.f32.mrf.mxu0 }
  0xa2   :  { %v107_v9 = vadd.f32 %v164_v5, %v106_v8 }
  0xa4   :  { %110 = vst [vmem:[#allocation7 + $0x8] sm:$0xff] %v107_v9 }
  0xa5   :  { %123 = dma.vmem_to_hbm [thread:$0]  %s116_s25, 256, %s118_s28, [#allocation4], %s248_s29, %s248_s29, %s249_s30  }
  0xa6   :  { %241 = dma.done.wait [#allocation4], 256  }
  0xa7   :  { %242 = vsyncadd [#allocation4], 4294967040 }
  0xa8   :  { %128 = vsyncpa [#allocation3], 1 }
  0xa9   :  { %129 = vsyncpa [#allocation6], 1 }
  0xaa   :  { %130 = vsyncpa [#allocation4], 1 }

</bundles_post_ra>
